<compile_context>
chip_gen: v6e
topology: v6e:2x2x1
jax: 0.10.0
libtpu: 0.0.40
codegen_flags: <defaults>
</compile_context>

<pallas_src>
import functools

import jax
import jax.numpy as jnp
from jax import lax
from jax.experimental import pallas as pl
from jax.experimental.pallas import tpu as pltpu

LANES = 128
MAX_TILE_ROWS = 2048      # (2048, 128) f32 block = 1 MiB per input per step
_PAD_LOGIT = -1.0e4       # with target 0 -> bce==0, pt==1, focal term exactly 0


def _round_up(x, m):
    return (x + m - 1) // m * m


def _focal_loss_kernel(x_ref, t_ref, out_ref, acc_ref, *,
                       gamma, tile_rows, inner, total_rows):
    j = pl.program_id(0)          # core-parallel split (v7x: one per TC)
    i = pl.program_id(1)          # sequential reduction axis

    @pl.when(i == 0)
    def _init():
        acc_ref[...] = jnp.zeros_like(acc_ref)

    x = x_ref[...].astype(jnp.float32)
    t = t_ref[...].astype(jnp.float32)

    # Numerically-stable BCE with logits (torch formulation):
    #   bce = max(x, 0) - x*t + log1p(exp(-|x|))
    bce = jnp.maximum(x, 0.0) - x * t + jnp.log1p(jnp.exp(-jnp.abs(x)))
    pt = jnp.exp(-bce)
    one_m_pt = 1.0 - pt

    # Specialize the focusing term: integer gamma -> repeated multiply.
    # (float pow lowers to log+exp on the EUP; gamma=2 is the common case)
    g = float(gamma)
    if g == int(g) and 0.0 <= g <= 8.0:
        gi = int(g)
        w = jnp.ones_like(one_m_pt) if gi == 0 else one_m_pt
        for _ in range(max(gi - 1, 0)):
            w = w * one_m_pt
    else:
        w = one_m_pt ** g
    fl = w * bce                  # alpha folded into the final scalar scale

    # Valid rows of this *logical* block (only the last block can be ragged;
    # indices are per-tile row counts, so no flattened-index overflow risk).
    b = j * inner + i
    valid = total_rows - b * tile_rows

    @pl.when(valid >= tile_rows)
    def _full():                  # mask-free fast path (all but the last block)
        acc_ref[...] += fl

    @pl.when(valid < tile_rows)
    def _ragged():                # last / revisited block: mask invalid rows
        rows = lax.broadcasted_iota(jnp.int32, fl.shape, 0)
        acc_ref[...] += jnp.where(rows < valid, fl, 0.0)

    @pl.when(i == pl.num_programs(1) - 1)
    def _finalize():              # one-time reduce to a lane-dense partial row
        out_ref[...] = jnp.sum(acc_ref[...], axis=0).reshape(1, 1, LANES)


def focal_loss(logits, targets, alpha=1.0, gamma=2.0, max_tile_rows=MAX_TILE_ROWS):
    """Pallas TPU focal loss. Returns a scalar f32, mean over all elements."""
    n_total = logits.size
    x = jnp.ravel(logits)
    t = jnp.ravel(targets)

    # Pad only to a lane multiple (<=127 elements) in the ORIGINAL dtype; the
    # pad values contribute exactly zero loss, so no lane mask is needed.
    pad = (-n_total) % LANES
    if pad:
        x = jnp.pad(x, (0, pad), constant_values=_PAD_LOGIT)
        t = jnp.pad(t, (0, pad), constant_values=0)

    total_rows = (n_total + pad) // LANES
    tile_rows = _round_up(min(int(max_tile_rows), total_rows), 8)
    num_blocks = pl.cdiv(total_rows, tile_rows)
    nsplit = 2 if num_blocks >= 2 else 1          # use both TCs on v7x
    inner = pl.cdiv(num_blocks, nsplit)

    x2 = x.reshape(total_rows, LANES)
    t2 = t.reshape(total_rows, LANES)

    def in_map(j, i):
        # Clamp so a revisited (out-of-range) logical block re-reads the last
        # real block; its contribution is fully masked in-kernel.
        return (jnp.minimum(j * inner + i, num_blocks - 1), 0)

    kernel = functools.partial(
        _focal_loss_kernel,
        gamma=float(gamma),
        tile_rows=tile_rows,
        inner=inner,
        total_rows=total_rows,
    )

    partials = pl.pallas_call(
        kernel,
        out_shape=jax.ShapeDtypeStruct((nsplit, 1, LANES), jnp.float32),
        grid_spec=pltpu.PrefetchScalarGridSpec(
            num_scalar_prefetch=0,
            grid=(nsplit, inner),
            in_specs=[
                pl.BlockSpec((tile_rows, LANES), in_map),
                pl.BlockSpec((tile_rows, LANES), in_map),
            ],
            out_specs=pl.BlockSpec((1, 1, LANES), lambda j, i: (j, 0, 0)),
            scratch_shapes=[pltpu.VMEM((tile_rows, LANES), jnp.float32)],
        ),
        compiler_params=pltpu.CompilerParams(
            dimension_semantics=("parallel", "arbitrary"),
        ),
    )(x2, t2)

    return jnp.sum(partials) * (float(alpha) / float(n_total))


def _focal_loss_ref(logits, targets, alpha=1.0, gamma=2.0):
    x = logits.astype(jnp.float32)
    t = targets.astype(jnp.float32)
    bce = jnp.maximum(x, 0.0) - x * t + jnp.log1p(jnp.exp(-jnp.abs(x)))
    pt = jnp.exp(-bce)
    return jnp.mean(alpha * (1.0 - pt) ** gamma * bce)


if __name__ == "__main__":
    key = jax.random.PRNGKey(0)
    k1, k2, k3, k4, k5, k6 = jax.random.split(key, 6)

    # Main case: NCHW segmentation-style inputs, default alpha/gamma.
    logits = jax.random.normal(k1, (2, 4, 16, 16), dtype=jnp.float32)
    targets = (jax.random.uniform(k2, (2, 4, 16, 16)) > 0.5).astype(jnp.float32)
    out = jax.block_until_ready(focal_loss(logits, targets, alpha=1.0, gamma=2.0))
    ref = _focal_loss_ref(logits, targets, alpha=1.0, gamma=2.0)
    assert jnp.allclose(out, ref, rtol=1e-5, atol=1e-6), (out, ref)

    # Ragged-rows + 2-way split path (small tiles force num_blocks=3, nsplit=2),
    # integer gamma != 2 exercises the repeated-multiply specialization.
    logits2 = jax.random.normal(k3, (2, 4, 16, 17), dtype=jnp.float32)
    targets2 = (jax.random.uniform(k4, (2, 4, 16, 17)) > 0.5).astype(jnp.float32)
    out2 = jax.block_until_ready(
        focal_loss(logits2, targets2, alpha=0.5, gamma=3.0, max_tile_rows=8))
    ref2 = _focal_loss_ref(logits2, targets2, alpha=0.5, gamma=3.0)
    assert jnp.allclose(out2, ref2, rtol=1e-5, atol=1e-6), (out2, ref2)

    # Lane-padding path (945 elements, not a multiple of 128).
    logits3 = jax.random.normal(k5, (3, 5, 7, 9), dtype=jnp.float32)
    targets3 = (jax.random.uniform(k6, (3, 5, 7, 9)) > 0.5).astype(jnp.float32)
    out3 = jax.block_until_ready(focal_loss(logits3, targets3))
    ref3 = _focal_loss_ref(logits3, targets3)
    assert jnp.allclose(out3, ref3, rtol=1e-5, atol=1e-6), (out3, ref3)

    print("KERNEL_OK")
</pallas_src>

<mosaic_0001>
module attributes {stable_mosaic.version = 11 : i64} {
  func.func @_focal_loss_kernel(%arg0: i32, %arg1: i32, %arg2: memref<16x128xf32, #tpu.memory_space<vmem>>, %arg3: memref<16x128xf32, #tpu.memory_space<vmem>>, %arg4: memref<1x1x128xf32, #tpu.memory_space<vmem>>, %arg5: memref<16x128xf32, #tpu.memory_space<vmem>>) attributes {dimension_semantics = [#tpu.dimension_semantics<parallel>, #tpu.dimension_semantics<arbitrary>], iteration_bounds = array<i64: 1, 1>, scalar_prefetch = 0 : i64, scratch_operands = 1 : i64, tpu.core_type = #tpu.core_type<tc>, window_params = [{transform_indices = @transform_0, window_bounds = array<i64: 16, 128>}, {transform_indices = @transform_1, window_bounds = array<i64: 16, 128>}, {transform_indices = @transform_2, window_bounds = array<i64: 1, 1, 128>}]} {
    %c0_i32 = arith.constant 0 : i32
    %0 = arith.cmpi eq, %arg1, %c0_i32 : i32
    %1 = arith.extui %0 : i1 to i32
    %c0_i32_0 = arith.constant 0 : i32
    %2 = arith.cmpi ne, %1, %c0_i32_0 : i32
    scf.if %2 {
      %cst_14 = arith.constant 0.000000e+00 : f32
      %35 = vector.broadcast %cst_14 : f32 to vector<16x128xf32>
      %c0_15 = arith.constant 0 : index
      %c0_16 = arith.constant 0 : index
      %36 = vector.load %arg5[%c0_15, %c0_16] : memref<16x128xf32, #tpu.memory_space<vmem>>, vector<16x128xf32>
      tpu.vector_store %arg5[%c0_15, %c0_16], %35 {strides = array<i32>} : memref<16x128xf32, #tpu.memory_space<vmem>>, vector<16x128xf32>,
    } else {
    }
    %c0 = arith.constant 0 : index
    %c0_1 = arith.constant 0 : index
    %3 = vector.load %arg2[%c0, %c0_1] : memref<16x128xf32, #tpu.memory_space<vmem>>, vector<16x128xf32>
    %c0_2 = arith.constant 0 : index
    %c0_3 = arith.constant 0 : index
    %4 = vector.load %arg3[%c0_2, %c0_3] : memref<16x128xf32, #tpu.memory_space<vmem>>, vector<16x128xf32>
    %cst = arith.constant 0.000000e+00 : f32
    %5 = vector.broadcast %cst : f32 to vector<16x128xf32>
    %6 = arith.maximumf %3, %5 : vector<16x128xf32>
    %7 = arith.mulf %3, %4 : vector<16x128xf32>
    %8 = arith.subf %6, %7 : vector<16x128xf32>
    %9 = math.absf %3 : vector<16x128xf32>
    %cst_4 = arith.constant 0.000000e+00 : f32
    %10 = vector.broadcast %cst_4 : f32 to vector<16x128xf32>
    %11 = arith.subf %10, %9 : vector<16x128xf32>
    %12 = math.exp %11 : vector<16x128xf32>
    %13 = math.log1p %12 : vector<16x128xf32>
    %14 = arith.addf %8, %13 : vector<16x128xf32>
    %cst_5 = arith.constant 0.000000e+00 : f32
    %15 = vector.broadcast %cst_5 : f32 to vector<16x128xf32>
    %16 = arith.subf %15, %14 : vector<16x128xf32>
    %17 = math.exp %16 : vector<16x128xf32>
    %cst_6 = arith.constant 1.000000e+00 : f32
    %18 = vector.broadcast %cst_6 : f32 to vector<16x128xf32>
    %19 = arith.subf %18, %17 : vector<16x128xf32>
    %20 = arith.mulf %19, %19 : vector<16x128xf32>
    %21 = arith.mulf %20, %14 : vector<16x128xf32>
    %c1_i32 = arith.constant 1 : i32
    %22 = arith.muli %arg0, %c1_i32 : i32
    %23 = arith.addi %22, %arg1 : i32
    %c16_i32 = arith.constant 16 : i32
    %24 = arith.muli %23, %c16_i32 : i32
    %c16_i32_7 = arith.constant 16 : i32
    %25 = arith.subi %c16_i32_7, %24 : i32
    %c16_i32_8 = arith.constant 16 : i32
    %26 = arith.cmpi sge, %25, %c16_i32_8 : i32
    %27 = arith.extui %26 : i1 to i32
    %c0_i32_9 = arith.constant 0 : i32
    %28 = arith.cmpi ne, %27, %c0_i32_9 : i32
    scf.if %28 {
      %c0_14 = arith.constant 0 : index
      %c0_15 = arith.constant 0 : index
      %35 = vector.load %arg5[%c0_14, %c0_15] : memref<16x128xf32, #tpu.memory_space<vmem>>, vector<16x128xf32>
      %36 = arith.addf %35, %21 : vector<16x128xf32>
      %c0_16 = arith.constant 0 : index
      %c0_17 = arith.constant 0 : index
      %37 = vector.load %arg5[%c0_16, %c0_17] : memref<16x128xf32, #tpu.memory_space<vmem>>, vector<16x128xf32>
      tpu.vector_store %arg5[%c0_16, %c0_17], %36 {strides = array<i32>} : memref<16x128xf32, #tpu.memory_space<vmem>>, vector<16x128xf32>,
    } else {
    }
    %c16_i32_10 = arith.constant 16 : i32
    %29 = arith.cmpi slt, %25, %c16_i32_10 : i32
    %30 = arith.extui %29 : i1 to i32
    %c0_i32_11 = arith.constant 0 : i32
    %31 = arith.cmpi ne, %30, %c0_i32_11 : i32
    scf.if %31 {
      %35 = tpu.iota {dimensions = array<i32: 0>} : vector<16x128xi32>
      %c0_14 = arith.constant 0 : index
      %c0_15 = arith.constant 0 : index
      %36 = vector.load %arg5[%c0_14, %c0_15] : memref<16x128xf32, #tpu.memory_space<vmem>>, vector<16x128xf32>
      %37 = vector.broadcast %25 : i32 to vector<16x128xi32>
      %38 = arith.cmpi slt, %35, %37 : vector<16x128xi32>
      %cst_16 = arith.constant 0.000000e+00 : f32
      %39 = vector.broadcast %cst_16 : f32 to vector<16x128xf32>
      %40 = arith.select %38, %21, %39 : vector<16x128xi1>, vector<16x128xf32>
      %41 = arith.addf %36, %40 : vector<16x128xf32>
      %c0_17 = arith.constant 0 : index
      %c0_18 = arith.constant 0 : index
      %42 = vector.load %arg5[%c0_17, %c0_18] : memref<16x128xf32, #tpu.memory_space<vmem>>, vector<16x128xf32>
      tpu.vector_store %arg5[%c0_17, %c0_18], %41 {strides = array<i32>} : memref<16x128xf32, #tpu.memory_space<vmem>>, vector<16x128xf32>,
    } else {
    }
    %c0_i32_12 = arith.constant 0 : i32
    %32 = arith.cmpi eq, %arg1, %c0_i32_12 : i32
    %33 = arith.extui %32 : i1 to i32
    %c0_i32_13 = arith.constant 0 : i32
    %34 = arith.cmpi ne, %33, %c0_i32_13 : i32
    scf.if %34 {
      %c0_14 = arith.constant 0 : index
      %c0_15 = arith.constant 0 : index
      %35 = vector.load %arg5[%c0_14, %c0_15] : memref<16x128xf32, #tpu.memory_space<vmem>>, vector<16x128xf32>
      %cst_16 = arith.constant dense<0.000000e+00> : vector<128xf32>
      %36 = vector.multi_reduction <add>, %35, %cst_16 [0] : vector<16x128xf32> to vector<128xf32>
      %37 = vector.shape_cast %36 : vector<128xf32> to vector<1x1x128xf32>
      %c0_17 = arith.constant 0 : index
      %c0_18 = arith.constant 0 : index
      %c0_19 = arith.constant 0 : index
      %38 = vector.load %arg4[%c0_17, %c0_18, %c0_19] : memref<1x1x128xf32, #tpu.memory_space<vmem>>, vector<1x1x128xf32>
      tpu.vector_store %arg4[%c0_17, %c0_18, %c0_19], %37 {strides = array<i32>} : memref<1x1x128xf32, #tpu.memory_space<vmem>>, vector<1x1x128xf32>,
    } else {
    }
    return
  }
  func.func @transform_0(%arg0: i32, %arg1: i32) -> (i32, i32) {
    %c1_i32 = arith.constant 1 : i32
    %0 = arith.muli %arg0, %c1_i32 : i32
    %1 = arith.addi %0, %arg1 : i32
    %c0_i32 = arith.constant 0 : i32
    %2 = arith.minsi %1, %c0_i32 : i32
    %c0_i32_0 = arith.constant 0 : i32
    %c0_i32_1 = arith.constant 0 : i32
    return %2, %c0_i32_0 : i32, i32
  }
  func.func @transform_1(%arg0: i32, %arg1: i32) -> (i32, i32) {
    %c1_i32 = arith.constant 1 : i32
    %0 = arith.muli %arg0, %c1_i32 : i32
    %1 = arith.addi %0, %arg1 : i32
    %c0_i32 = arith.constant 0 : i32
    %2 = arith.minsi %1, %c0_i32 : i32
    %c0_i32_0 = arith.constant 0 : i32
    %c0_i32_1 = arith.constant 0 : i32
    return %2, %c0_i32_0 : i32, i32
  }
  func.func @transform_2(%arg0: i32, %arg1: i32) -> (i32, i32, i32) {
    %c0_i32 = arith.constant 0 : i32
    %c0_i32_0 = arith.constant 0 : i32
    %c0_i32_1 = arith.constant 0 : i32
    return %arg0, %c0_i32, %c0_i32_0 : i32, i32, i32
  }
}

</mosaic_0001>

<bundles_post_ra>
// kernel: tpu_custom_call.1
= control target key start
LH: loop header
LB: loop body
LE: loop exit
PB: predicated region body
PF: predicated region fallthrough
CT: control target
= control target key end

     0   :  { %7 = vsyncpa [#allocation4], 0  ;;  %s292_s0 = inlined_call_operand.hbm [shape: f32[16,128], index: 0, kind: input, shape index: {}]   ;;  %s293_s1 = inlined_call_operand.hbm [shape: f32[16,128], index: 1, kind: input, shape index: {}]   ;;  %s294_s2 = inlined_call_operand.hbm [shape: f32[1,1,128], index: 2, kind: output, shape index: {}]  }
   0x1   :  { %8 = vsyncpa [#allocation7], 0 }
   0x2   :  { %9 = vsyncpa [#allocation5], 0  ;;  %s263_s9 = smov [#allocation3]  }
   0x3   :  { %s21_s10 = sshll.u32 %s263_s9, 4  ;;  %s22_s10 = int_to_ptr.vmem [resolvable:$true] %s21_s10 }
   0x4   :  { %s205_s11 = scalar_lea.vmem %s22_s10, 256  ;;  %p210_p1 = scmp.lt.s32.totalorder %s22_s10, %s22_s10 }
   0x5   :  { %p206_p0 = scmp.ne.s32.totalorder %s22_s10, %s205_s11  ;;  %p211_p2 = scmp.lt.s32.totalorder %s205_s11, %s205_s11 }
   0x7   :  { %p212_p3 = por %p211_p2, %p210_p1 }
   0x9   :  { %p213_p4 = pnand %p212_p3, %p206_p0 }
   0xb   :  { %216 = shalt.err (!%p213_p4)
}
   0xc   :  { %s264_s12 = smov 128   ;;  %s265_s13 = smov 8  }
   0xd   :  { %27 = dma.hbm_to_vmem [thread:$0]  %s292_s0, 256, %s22_s10, [#allocation4], %s264_s12, %s264_s12, %s265_s13  }
   0xe   :  { %s266_s16 = smov [#allocation6]  }
   0xf   :  { %s39_s17 = sshll.u32 %s266_s16, 4  ;;  %s40_s17 = int_to_ptr.vmem [resolvable:$true] %s39_s17 }
  0x10   :  { %s225_s18 = scalar_lea.vmem %s40_s17, 256  ;;  %p230_p6 = scmp.lt.s32.totalorder %s40_s17, %s40_s17 }
  0x11   :  { %p226_p5 = scmp.ne.s32.totalorder %s40_s17, %s225_s18  ;;  %p231_p7 = scmp.lt.s32.totalorder %s225_s18, %s225_s18 }
  0x13   :  { %p232_p8 = por %p231_p7, %p230_p6 }
  0x15   :  { %p233_p9 = pnand %p232_p8, %p226_p5 }
  0x17   :  { %236 = shalt.err (!%p233_p9)
}
  0x18   :  { %45 = dma.hbm_to_vmem [thread:$0]  %s293_s1, 256, %s40_s17, [#allocation7], %s264_s12, %s264_s12, %s265_s13  }
  0x19   :  { %257 = dma.done.wait [#allocation4], 256  }
  0x1a   :  { %258 = vsyncadd [#allocation4], 4294967040 }
  0x1b   :  { %259 = dma.done.wait [#allocation7], 256  }
  0x1c   :  { %260 = vsyncadd [#allocation7], 4294967040  ;;  %v66_v0 = vld [vmem:[#allocation3] sm:$0xff]  ;;  %v67_v1 = vld [vmem:[#allocation3 + $0x8] sm:$0xff]  ;;  %s267_s0 = smov [#allocation8]  }
  0x1d   :  { %v76_v2 = vand.u32 2147483647, %v66_v0  ;;  %v77_v3 = vand.u32 2147483647, %v67_v1  ;;  %v68_v14 = vld [vmem:[#allocation6] sm:$0xff]  ;;  %v69_v15 = vld [vmem:[#allocation6 + $0x8] sm:$0xff] }
  0x1e   :  { %v70_v17 = vmax.f32 %v66_v0, 0.0  ;;  %v72_v18 = vmul.f32 %v68_v14, %v66_v0  ;;  %v71_v21 = vmax.f32 %v67_v1, 0.0  ;;  %v73_v22 = vmul.f32 %v69_v15, %v67_v1  ;;  %s166_s1 = sshll.u32 %s267_s0, 4  ;;  %s167_s1 = int_to_ptr.vmem [resolvable:$true] %s166_s1 }
  0x1f   :  { %v78_v4 = vsub.f32 0.0, %v76_v2  ;;  %v79_v5 = vsub.f32 0.0, %v77_v3  ;;  %s237_s21 = scalar_lea.vmem %s167_s1, 16  ;;  %s241_s22 = scalar_lea.vmem %s167_s1, 32 }
  0x20   :  { %v74_v26 = vsub.f32 %v70_v17, %v72_v18  ;;  %v75_v29 = vsub.f32 %v71_v21, %v73_v22  ;;  %p238_p10 = scmp.ne.s32.totalorder %s167_s1, %s237_s21  ;;  %p242_p11 = scmp.lt.s32.totalorder %s167_s1, %s167_s1 }
  0x21   :  { %v80_v6 = vmul.f32 1.442695, %v78_v4  ;;  %v82_v7 = vmul.f32 1.442695, %v79_v5  ;;  %p243_p12 = scmp.lt.s32.totalorder %s241_s22, %s237_s21 }
  0x23   :  { %185 = vpow2.f32 %v80_v6  ;;  %p244_p13 = por %p243_p12, %p242_p11 }
  0x24   :  { %187 = vpow2.f32 %v82_v7 }
  0x25   :  { %p245_p0 = pnand %p244_p13, %p238_p10 }
  0x30   :  { %v186_v8 = vpop.eup %185 }
  0x31   :  { %v188_v9 = vpop.eup %187  ;;  %v84_v10 = vadd.f32 1.0, %v186_v8  ;;  %v87_v12 = vmul.f32 -0.5, %v186_v8  ;;  %v90_v19 = vand.u32 2147483647, %v186_v8 }
  0x32   :  { %v93_v11 = vadd.f32 1.0, %v188_v9  ;;  %v96_v13 = vmul.f32 -0.5, %v188_v9  ;;  %v99_v23 = vand.u32 2147483647, %v188_v9 }
  0x33   :  { %189 = vlog2.f32 %v84_v10  ;;  %v88_v16 = vadd.f32 1.0, %v87_v12  ;;  %vm91_vm0 = vcmp.lt.f32.partialorder %v90_v19, 0.0004427343 }
  0x34   :  { %191 = vlog2.f32 %v93_v11  ;;  %v97_v20 = vadd.f32 1.0, %v96_v13  ;;  %vm100_vm1 = vcmp.lt.f32.partialorder %v99_v23, 0.0004427343 }
  0x35   :  { %v89_v24 = vmul.f32 %v186_v8, %v88_v16 }
  0x36   :  { %v98_v27 = vmul.f32 %v188_v9, %v97_v20 }
  0x40   :  { %v190_v25 = vpop.eup %189 }
  0x41   :  { %v192_v28 = vpop.eup %191  ;;  %v86_v30 = vmul.f32 0.6931472, %v190_v25 }
  0x42   :  { %v95_v31 = vmul.f32 0.6931472, %v192_v28 }
  0x43   :  { %v92_v32 = vsel %vm91_vm0, %v89_v24, %v86_v30 }
  0x44   :  { %v101_v33 = vsel %vm100_vm1, %v98_v27, %v95_v31  ;;  %v102_v34 = vadd.f32 %v92_v32, %v74_v26 }
  0x45   :  { %v103_v35 = vadd.f32 %v101_v33, %v75_v29 }
  0x46   :  { %v104_v36 = vsub.f32 0.0, %v102_v34 }
  0x47   :  { %v105_v37 = vsub.f32 0.0, %v103_v35 }
  0x48   :  { %v106_v38 = vmul.f32 1.442695, %v104_v36 }
  0x49   :  { %v108_v39 = vmul.f32 1.442695, %v105_v37 }
  0x4a   :  { %193 = vpow2.f32 %v106_v38 }
  0x4b   :  { %195 = vpow2.f32 %v108_v39 }
  0x57   :  { %v194_v40 = vpop.eup %193 }
  0x58   :  { %v196_v41 = vpop.eup %195  ;;  %v110_v42 = vsub.f32 1.0, %v194_v40 }
  0x59   :  { %v111_v43 = vsub.f32 1.0, %v196_v41 }
  0x5a   :  { %v112_v44 = vmul.f32 %v110_v42, %v110_v42 }
  0x5b   :  { %v113_v45 = vmul.f32 %v111_v43, %v111_v43 }
  0x5c   :  { %v114_v46 = vmul.f32 %v112_v44, %v102_v34 }
  0x5d   :  { %v115_v47 = vmul.f32 %v113_v45, %v103_v35 }
  0x5f   :  { %v152_v48 = vadd.f32 %v115_v47, %v114_v46 }
  0x61   :  { %v153_v49 = vrot.slane %v152_v48, 4 }
  0x63   :  { %v154_v50 = vadd.f32 %v153_v49, %v152_v48 }
  0x65   :  { %v155_v51 = vrot.slane %v154_v50, 2 }
  0x67   :  { %v156_v52 = vadd.f32 %v155_v51, %v154_v50 }
  0x69   :  { %v157_v53 = vrot.slane %v156_v52, 1 }
  0x6b   :  { %v158_v54 = vadd.f32 %v157_v53, %v156_v52 }
  0x6d   :  { %159 = vst [vmem:[#allocation8] sm:$0x1] %v158_v54 }
  0x6e   :  { %248 = shalt.err (!%p245_p0)
}
  0x6f   :  { %169 = dma.vmem_to_hbm [thread:$0]  %s167_s1, 16, %s294_s2, [#allocation5]  }
  0x70   :  { %261 = dma.done.wait [#allocation5], 16  }
  0x71   :  { %262 = vsyncadd [#allocation5], 4294967280 }
  0x72   :  { %173 = vsyncpa [#allocation4], 1 }
  0x73   :  { %174 = vsyncpa [#allocation7], 1 }
  0x74   :  { %175 = vsyncpa [#allocation5], 1 }

</bundles_post_ra>
